<compile_context>
chip_gen: v5e
topology: v5e:2x2
jax: 0.10.0
libtpu: 0.0.40
codegen_flags: <defaults>
</compile_context>

<pallas_src>
import functools

import jax
import jax.numpy as jnp
from jax import lax
from jax.experimental import pallas as pl
from jax.experimental.pallas import tpu as pltpu

LANES = 128


def _dice_stats_kernel(pred_ref, tgt_ref, out_ref, *, acc_rows):
    """Per (batch, spatial-tile) partial dice statistics.

    pred_ref: (C, TR, 128) f32 logits (planar class layout)
    tgt_ref:  (TR, 128) int32 labels
    out_ref:  (3*C, acc_rows, 128) f32 partial sums:
              rows [0:C)   -> sum(softmax_c * 1[target==c])   (intersection)
              rows [C:2C)  -> sum(softmax_c)                   (pred prob mass)
              rows [2C:3C) -> sum(1[target==c])                (target count)
    """
    x = pred_ref[...]                              # (C, TR, 128)
    t = tgt_ref[...]                               # (TR, 128) int32
    C, TR, L = x.shape

    # Numerically stable softmax over the class (plane) axis — all elementwise VPU/EUP.
    m = jnp.max(x, axis=0)                         # (TR,128): C-1 elementwise maxes
    ex = jnp.exp(x - m[None, :, :])                # (C,TR,128): C exps / voxel (EUP)
    se = jnp.sum(ex, axis=0)                       # (TR,128): elementwise adds
    r = 1.0 / se                                   # ONE exact reciprocal per voxel
    probs = ex * r[None, :, :]                     # softmax(pred, dim=1)

    # Per-class membership via compare + select (no float one-hot multiply).
    cls = lax.broadcasted_iota(jnp.int32, (C, TR, L), 0)
    mask = cls == t[None, :, :]                    # (C,TR,128) bool
    inter = jnp.where(mask, probs, 0.0)            # softmax_c where target==c
    tcnt = jnp.where(mask, 1.0, 0.0)               # 1[target==c]

    # Fold the TR sublane rows into `acc_rows` rows with pure elementwise adds; the
    # cross-lane / cross-sublane reduction happens exactly once, in JAX, on tiny data.
    def fold(v):                                   # (C, TR, L) -> (C, acc_rows, L)
        if acc_rows == TR:
            return v
        acc = v[:, 0:acc_rows, :]
        for i in range(1, TR // acc_rows):
            acc = acc + v[:, i * acc_rows:(i + 1) * acc_rows, :]
        return acc

    out_ref[0 * C:1 * C] = fold(inter)
    out_ref[1 * C:2 * C] = fold(probs)
    out_ref[2 * C:3 * C] = fold(tcnt)


def dice_loss(pred, target, num_classes=4, smooth=1.0, max_tile_rows=512):
    """pred: (B, C, D, H, W) float logits; target: (B, D, H, W) or (B, 1, D, H, W) ints."""
    B, C, D, H, W = pred.shape
    assert C == num_classes
    N = D * H * W
    # TODO(synk): pad ragged volumes (N % 128 != 0) with a validity mask; not needed here.
    assert N % LANES == 0, "flattened spatial volume must be a multiple of 128"
    NR = N // LANES

    # Tile rows: largest multiple-of-8 divisor of NR up to max_tile_rows (keeps the
    # double-buffered working set ~a few MiB on every generation); fall back to full NR.
    TR = NR
    for t in range(min(NR, max_tile_rows), 0, -1):
        if NR % t == 0 and t % 8 == 0:
            TR = t
            break
    acc_rows = 8 if TR % 8 == 0 else TR
    KT = NR // TR

    pred4 = pred.reshape(B, C, NR, LANES).astype(jnp.float32)
    if target.ndim == 5:
        target = target[:, 0]
    tgt3 = target.reshape(B, NR, LANES).astype(jnp.int32)

    stats_planes = 3 * C
    out_shape = jax.ShapeDtypeStruct((B, KT, stats_planes, acc_rows, LANES), jnp.float32)

    grid_spec = pltpu.PrefetchScalarGridSpec(
        num_scalar_prefetch=0,
        grid=(B, KT),
        in_specs=[
            pl.BlockSpec((pl.Squeezed(), C, TR, LANES), lambda b, k: (b, 0, k, 0)),
            pl.BlockSpec((pl.Squeezed(), TR, LANES), lambda b, k: (b, k, 0)),
        ],
        out_specs=pl.BlockSpec(
            (pl.Squeezed(), pl.Squeezed(), stats_planes, acc_rows, LANES),
            lambda b, k: (b, k, 0, 0, 0)),
    )

    stats = pl.pallas_call(
        functools.partial(_dice_stats_kernel, acc_rows=acc_rows),
        out_shape=out_shape,
        grid_spec=grid_spec,
        compiler_params=pltpu.CompilerParams(
            dimension_semantics=("parallel", "parallel")),
    )(pred4, tgt3)

    # Tiny JAX-side reduction over tiles / rows / lanes -> (B, 3, C).
    stats = stats.reshape(B, KT, 3, C, acc_rows * LANES).sum(axis=(1, 4))
    inter, psum, tcnt = stats[:, 0], stats[:, 1], stats[:, 2]

    dice = (2.0 * inter + smooth) / (psum + tcnt + smooth)     # (B, C)
    return jnp.sum(1.0 - jnp.mean(dice, axis=0)) / num_classes


def dice_loss_ref(pred, target, num_classes=4, smooth=1.0):
    """Pure-JAX reference mirroring the PyTorch DiceLoss module."""
    if target.ndim == 5:
        target = target[:, 0]
    tgt = target.astype(jnp.int32)
    probs = jax.nn.softmax(pred, axis=1)
    loss = 0.0
    for cls in range(num_classes):
        p = probs[:, cls]
        tcls = (tgt == cls).astype(jnp.float32)
        inter = jnp.sum(p * tcls, axis=(1, 2, 3))
        union = jnp.sum(p, axis=(1, 2, 3)) + jnp.sum(tcls, axis=(1, 2, 3))
        dice = (2.0 * inter + smooth) / (union + smooth)
        loss += 1.0 - jnp.mean(dice)
    return loss / num_classes


if __name__ == "__main__":
    B, C, D, H, W = 2, 4, 8, 16, 16     # N = 2048 voxels -> 16 rows of 128 lanes
    key = jax.random.PRNGKey(0)
    k1, k2 = jax.random.split(key)
    pred = jax.random.normal(k1, (B, C, D, H, W), dtype=jnp.float32)
    target = jax.random.randint(k2, (B, D, H, W), 0, C, dtype=jnp.int32)

    ref = jax.block_until_ready(dice_loss_ref(pred, target))

    # Single spatial tile per batch element (exercises the row-fold path).
    loss1 = jax.block_until_ready(dice_loss(pred, target))
    assert jnp.allclose(loss1, ref, atol=1e-5, rtol=1e-5), (loss1, ref)

    # Force multiple spatial tiles (exercises the tiled / partial-stats path).
    loss2 = jax.block_until_ready(dice_loss(pred, target, max_tile_rows=8))
    assert jnp.allclose(loss2, ref, atol=1e-5, rtol=1e-5), (loss2, ref)

    print("KERNEL_OK")
</pallas_src>

<mosaic_0001>
module attributes {stable_mosaic.version = 11 : i64} {
  func.func @_dice_stats_kernel(%arg0: i32, %arg1: i32, %arg2: memref<1x4x16x128xf32, #tpu.memory_space<vmem>>, %arg3: memref<1x16x128xi32, #tpu.memory_space<vmem>>, %arg4: memref<1x1x12x8x128xf32, #tpu.memory_space<vmem>>) attributes {dimension_semantics = [#tpu.dimension_semantics<parallel>, #tpu.dimension_semantics<parallel>], iteration_bounds = array<i64: 2, 1>, scalar_prefetch = 0 : i64, scratch_operands = 0 : i64, tpu.core_type = #tpu.core_type<tc>, window_params = [{transform_indices = @transform_0, window_bounds = array<i64: 1, 4, 16, 128>}, {transform_indices = @transform_1, window_bounds = array<i64: 1, 16, 128>}, {transform_indices = @transform_2, window_bounds = array<i64: 1, 1, 12, 8, 128>}]} {
    %c0 = arith.constant 0 : index
    %c0_0 = arith.constant 0 : index
    %c0_1 = arith.constant 0 : index
    %c0_2 = arith.constant 0 : index
    %0 = vector.load %arg2[%c0, %c0_0, %c0_1, %c0_2] : memref<1x4x16x128xf32, #tpu.memory_space<vmem>>, vector<1x4x16x128xf32>
    %1 = vector.shape_cast %0 : vector<1x4x16x128xf32> to vector<4x16x128xf32>
    %c0_3 = arith.constant 0 : index
    %c0_4 = arith.constant 0 : index
    %c0_5 = arith.constant 0 : index
    %2 = vector.load %arg3[%c0_3, %c0_4, %c0_5] : memref<1x16x128xi32, #tpu.memory_space<vmem>>, vector<1x16x128xi32>
    %3 = vector.shape_cast %2 : vector<1x16x128xi32> to vector<16x128xi32>
    %cst = arith.constant dense<0xFF800000> : vector<16x128xf32>
    %4 = vector.multi_reduction <maximumf>, %1, %cst [0] : vector<4x16x128xf32> to vector<16x128xf32>
    %5 = vector.shape_cast %4 : vector<16x128xf32> to vector<1x16x128xf32>
    %6 = vector.broadcast %5 : vector<1x16x128xf32> to vector<4x16x128xf32>
    %7 = arith.subf %1, %6 : vector<4x16x128xf32>
    %8 = math.exp %7 : vector<4x16x128xf32>
    %cst_6 = arith.constant dense<0.000000e+00> : vector<16x128xf32>
    %9 = vector.multi_reduction <add>, %8, %cst_6 [0] : vector<4x16x128xf32> to vector<16x128xf32>
    %cst_7 = arith.constant 1.000000e+00 : f32
    %10 = vector.broadcast %cst_7 : f32 to vector<16x128xf32>
    %11 = arith.divf %10, %9 : vector<16x128xf32>
    %12 = vector.shape_cast %11 : vector<16x128xf32> to vector<1x16x128xf32>
    %13 = vector.broadcast %12 : vector<1x16x128xf32> to vector<4x16x128xf32>
    %14 = arith.mulf %8, %13 : vector<4x16x128xf32>
    %15 = tpu.iota {dimensions = array<i32: 0>} : vector<4x16x128xi32>
    %16 = vector.shape_cast %3 : vector<16x128xi32> to vector<1x16x128xi32>
    %17 = vector.broadcast %16 : vector<1x16x128xi32> to vector<4x16x128xi32>
    %18 = arith.cmpi eq, %15, %17 : vector<4x16x128xi32>
    %cst_8 = arith.constant 0.000000e+00 : f32
    %19 = vector.broadcast %cst_8 : f32 to vector<4x16x128xf32>
    %20 = arith.select %18, %14, %19 : vector<4x16x128xi1>, vector<4x16x128xf32>
    %cst_9 = arith.constant 1.000000e+00 : f32
    %cst_10 = arith.constant 0.000000e+00 : f32
    %21 = vector.broadcast %cst_9 : f32 to vector<4x16x128xf32>
    %22 = vector.broadcast %cst_10 : f32 to vector<4x16x128xf32>
    %23 = arith.select %18, %21, %22 : vector<4x16x128xi1>, vector<4x16x128xf32>
    %24 = vector.extract_strided_slice %20 {offsets = [0, 0, 0], sizes = [4, 8, 128], strides = [1, 1, 1]} : vector<4x16x128xf32> to vector<4x8x128xf32>
    %25 = vector.extract_strided_slice %20 {offsets = [0, 8, 0], sizes = [4, 8, 128], strides = [1, 1, 1]} : vector<4x16x128xf32> to vector<4x8x128xf32>
    %26 = arith.addf %24, %25 : vector<4x8x128xf32>
    %c0_11 = arith.constant 0 : index
    %c0_12 = arith.constant 0 : index
    %c0_13 = arith.constant 0 : index
    %c0_14 = arith.constant 0 : index
    %c0_15 = arith.constant 0 : index
    %27 = vector.load %arg4[%c0_11, %c0_12, %c0_13, %c0_14, %c0_15] : memref<1x1x12x8x128xf32, #tpu.memory_space<vmem>>, vector<1x1x4x8x128xf32>
    %28 = vector.shape_cast %27 : vector<1x1x4x8x128xf32> to vector<4x8x128xf32>
    %29 = vector.shape_cast %26 : vector<4x8x128xf32> to vector<1x1x4x8x128xf32>
    tpu.vector_store %arg4[%c0_11, %c0_12, %c0_13, %c0_14, %c0_15], %29 {strides = array<i32>} : memref<1x1x12x8x128xf32, #tpu.memory_space<vmem>>, vector<1x1x4x8x128xf32>,
    %30 = vector.extract_strided_slice %14 {offsets = [0, 0, 0], sizes = [4, 8, 128], strides = [1, 1, 1]} : vector<4x16x128xf32> to vector<4x8x128xf32>
    %31 = vector.extract_strided_slice %14 {offsets = [0, 8, 0], sizes = [4, 8, 128], strides = [1, 1, 1]} : vector<4x16x128xf32> to vector<4x8x128xf32>
    %32 = arith.addf %30, %31 : vector<4x8x128xf32>
    %c0_16 = arith.constant 0 : index
    %c0_17 = arith.constant 0 : index
    %c4 = arith.constant 4 : index
    %c0_18 = arith.constant 0 : index
    %c0_19 = arith.constant 0 : index
    %33 = vector.load %arg4[%c0_16, %c0_17, %c4, %c0_18, %c0_19] : memref<1x1x12x8x128xf32, #tpu.memory_space<vmem>>, vector<1x1x4x8x128xf32>
    %34 = vector.shape_cast %33 : vector<1x1x4x8x128xf32> to vector<4x8x128xf32>
    %35 = vector.shape_cast %32 : vector<4x8x128xf32> to vector<1x1x4x8x128xf32>
    tpu.vector_store %arg4[%c0_16, %c0_17, %c4, %c0_18, %c0_19], %35 {strides = array<i32>} : memref<1x1x12x8x128xf32, #tpu.memory_space<vmem>>, vector<1x1x4x8x128xf32>,
    %36 = vector.extract_strided_slice %23 {offsets = [0, 0, 0], sizes = [4, 8, 128], strides = [1, 1, 1]} : vector<4x16x128xf32> to vector<4x8x128xf32>
    %37 = vector.extract_strided_slice %23 {offsets = [0, 8, 0], sizes = [4, 8, 128], strides = [1, 1, 1]} : vector<4x16x128xf32> to vector<4x8x128xf32>
    %38 = arith.addf %36, %37 : vector<4x8x128xf32>
    %c0_20 = arith.constant 0 : index
    %c0_21 = arith.constant 0 : index
    %c8 = arith.constant 8 : index
    %c0_22 = arith.constant 0 : index
    %c0_23 = arith.constant 0 : index
    %39 = vector.load %arg4[%c0_20, %c0_21, %c8, %c0_22, %c0_23] : memref<1x1x12x8x128xf32, #tpu.memory_space<vmem>>, vector<1x1x4x8x128xf32>
    %40 = vector.shape_cast %39 : vector<1x1x4x8x128xf32> to vector<4x8x128xf32>
    %41 = vector.shape_cast %38 : vector<4x8x128xf32> to vector<1x1x4x8x128xf32>
    tpu.vector_store %arg4[%c0_20, %c0_21, %c8, %c0_22, %c0_23], %41 {strides = array<i32>} : memref<1x1x12x8x128xf32, #tpu.memory_space<vmem>>, vector<1x1x4x8x128xf32>,
    return
  }
  func.func @transform_0(%arg0: i32, %arg1: i32) -> (i32, i32, i32, i32) {
    %c0_i32 = arith.constant 0 : i32
    %c0_i32_0 = arith.constant 0 : i32
    %c0_i32_1 = arith.constant 0 : i32
    return %arg0, %c0_i32, %arg1, %c0_i32_0 : i32, i32, i32, i32
  }
  func.func @transform_1(%arg0: i32, %arg1: i32) -> (i32, i32, i32) {
    %c0_i32 = arith.constant 0 : i32
    %c0_i32_0 = arith.constant 0 : i32
    return %arg0, %arg1, %c0_i32 : i32, i32, i32
  }
  func.func @transform_2(%arg0: i32, %arg1: i32) -> (i32, i32, i32, i32, i32) {
    %c0_i32 = arith.constant 0 : i32
    %c0_i32_0 = arith.constant 0 : i32
    %c0_i32_1 = arith.constant 0 : i32
    %c0_i32_2 = arith.constant 0 : i32
    return %arg0, %arg1, %c0_i32, %c0_i32_0, %c0_i32_1 : i32, i32, i32, i32, i32
  }
}

</mosaic_0001>

<bundles_post_ra>
// kernel: tpu_custom_call.1
= control target key start
LH: loop header
LB: loop body
LE: loop exit
PB: predicated region body
PF: predicated region fallthrough
CT: control target
= control target key end

     0   :  { %7 = vsyncpa [#allocation3], 0  ;;  %s1009_s0 = inlined_call_operand.hbm [shape: f32[2,4,16,128], index: 0, kind: input, shape index: {}]   ;;  %s1010_s1 = inlined_call_operand.hbm [shape: s32[2,16,128], index: 1, kind: input, shape index: {}]   ;;  %s1011_s2 = inlined_call_operand.hbm [shape: f32[2,1,12,8,128], index: 2, kind: output, shape index: {}]  }
   0x1   :  { %9 = vsyncpa [#allocation3 + $0x1], 0 }
   0x2   :  { %10 = vsyncpa [#allocation6], 0 }
   0x3   :  { %12 = vsyncpa [#allocation6 + $0x1], 0 }
   0x4   :  { %13 = vsyncpa [#allocation4], 0 }
   0x5   :  { %15 = vsyncpa [#allocation4 + $0x1], 0  ;;  %s783_s9 = smov 0   ;;  %s785_s10 = smov 0  }
   0x6   :  { %s787_s11 = smov 0   ;;  %s789_s12 = smov 0  }
   0x7   :  { %s791_s13 = smov 0   ;;  %s793_s14 = smov 0  }
   0x8 LB: > { %s495_s15 = sadd.s32 4294967295, %s761_s14   ;;  %s496_s16 = sadd.s32 4294967294, %s761_s14   ;;  %s761_s14 = sphi %s793_s14, %s21_s14   ;;  %s757_s13 = sphi %s791_s13, %s1021_s13   ;;  %s753_s12 = sphi %s789_s12, %s1020_s12   ;;  %s749_s11 = sphi %s787_s11, %s1019_s11   ;;  %s745_s10 = sphi %s785_s10, %s1018_s10   ;;  %s741_s9 = sphi %s783_s9, %s1017_s9  }
   0x9   : > { %s33_s17 = sadd.s32 1, %s757_s13  ;;  %s42_s18 = sadd.s32 1, %s749_s11 }
   0xa   : > { %p35_p0 = scmp.ge.s32.totalorder %s33_s17, 2  ;;  %p49_p1 = scmp.ne.s32.totalorder %s749_s11, %s745_s10 }
   0xb   : > { %p50_p2 = scmp.eq.s32.totalorder %s761_s14, 0  ;;  %p55_p3 = scmp.ne.s32.totalorder %s745_s10, %s741_s9 }
   0xc   : > { %s1023_s17 = smov (%p35_p0, %s33_s17), 0  ;;  %p56_p5 = scmp.eq.s32.totalorder %s495_s15, 0 }
   0xd   : > { %p824_p4 = por %p50_p2, %p49_p1  ;;  %s37_s20 = ssub.s32 %s757_s13, %s1023_s17 }
   0xe   : > { %p109_p6 = scmp.eq.s32.totalorder %s495_s15, 1  ;;  %p40_p7 = scmp.eq.s32.totalorder %s37_s20, 0 }
   0xf   : > { %p830_p8 = por %p56_p5, %p55_p3  ;;  %p115_p10 = scmp.eq.s32.totalorder %s496_s16, 1 }
  0x10   : > { %p834_p9 = por %p109_p6, %p49_p1  ;;  %p498_p12 = scmp.ge.s32.totalorder %s761_s14, 2 }
  0x11   : > { %s839_s23 = scalar_select %p40_p7, %s749_s11, %s42_s18  }
  0x12   : > { %p841_p11 = por %p115_p10, %p55_p3  ;;  %p540_p13 = scmp.lt.s32.totalorder %s761_s14, 2 }
  0x13   : > { %s848_s25 = sand.u32 1, %s749_s11   ;;  %s519_s27 = sshll.u32 %s757_s13, 6 }
  0x14   : > { %s499_s26 = sshll.u32 %s848_s25, 6  ;;  %s146_s30 = scalar_lea.hbm %s1009_s0, %s519_s27 }
  0x15   : > { %s139_s3 = scalar_lea.vmem [#allocation2], %s499_s26  ;;  %s147_s5 = sshll.u32 %s146_s30, 4  ;;  %s148_s5 = int_to_ptr.hbm [resolvable:$true] %s147_s5 }
  0x16   : > { %s149_s4 = sshll.u32 %s139_s3, 4  ;;  %p857_p0 = pnand %p540_p13, %p824_p4  ;;  %s150_s4 = int_to_ptr.vmem [resolvable:$true] %s149_s4 }
  0x17   : > { %p505_p1 = scmp.ge.s32.totalorder %s761_s14, 1  ;;  %s136_s7 = scalar_lea.sflag [#allocation3], %s848_s25 }
  0x18   : > { %s763_s8 = smov 128   ;;  %s764_s15 = smov 8  }
  0x19   : > { %532 = dma.hbm_to_vmem [thread:$0]  (!%p857_p0), %s148_s5, 1024, %s150_s4, %s136_s7, %s763_s8, %s763_s8, %s764_s15  }
  0x1a   : > { %p181_p2 = scmp.lt.s32.totalorder %s761_s14, 3  ;;  %s502_s16 = sshll.u32 %s848_s25, 4 }
  0x1b   : > { %s520_s18 = sshll.u32 %s757_s13, 4  ;;  %s163_s27 = scalar_lea.vmem [#allocation5], %s502_s16 }
  0x1c   : > { %p182_p3 = pnand %p505_p1, %p181_p2  ;;  %s170_s19 = scalar_lea.hbm %s1010_s1, %s520_s18 }
  0x1d   : > { %s173_s28 = sshll.u32 %s163_s27, 4  ;;  %s171_s29 = sshll.u32 %s170_s19, 4  ;;  %s174_s28 = int_to_ptr.vmem [resolvable:$true] %s173_s28  ;;  %s172_s29 = int_to_ptr.hbm [resolvable:$true] %s171_s29 }
  0x1e   : > { %s160_s30 = scalar_lea.sflag [#allocation6], %s848_s25  ;;  %185 = sbr.rel (%p182_p3) target bundleno = 99 (0x63), region = 28 }
  0x1f   : > { %535 = dma.hbm_to_vmem [thread:$0]  (!%p857_p0), %s172_s29, 256, %s174_s28, %s160_s30, %s763_s8, %s763_s8, %s764_s15  }
  0x20   : > { %s875_s3 = sand.u32 (!%p182_p3), 1, %s745_s10  }
  0x21   : > { %s506_s4 = sshll.u32 (!%p182_p3), %s875_s3, 6  ;;  %s188_s5 = scalar_lea.sflag (!%p182_p3), [#allocation3], %s875_s3 }
  0x22   : > { %s191_s7 = scalar_lea.vmem (!%p182_p3), [#allocation2], %s506_s4 }
  0x23   : > { %728 = dma.done.wait (%p830_p8), %s188_s5, 1024  }
  0x24   : > { %730 = vsyncadd (%p830_p8), %s188_s5, 4294966272  ;;  %s507_s25 = sshll.u32 %s875_s3, 4  ;;  %s198_s6 = scalar_lea.sflag [#allocation6], %s875_s3 }
  0x25   : > { %s885_s8 = scalar_lea.vmem [#allocation5], %s507_s25 }
  0x26   : > { %732 = dma.done.wait (%p830_p8), %s198_s6, 256  }
  0x27   : > { %734 = vsyncadd (%p830_p8), %s198_s6, 4294967040  ;;  %v230_v0 = vld [vmem:[%s191_s7] sm:$0xff]  ;;  %v231_v1 = vld [vmem:[%s191_s7 + $0x8] sm:$0xff]  ;;  %s521_s21 = smul.u32 96, %s875_s3  ;;  %v765_v39 = vmov 0.0   ;;  %s365_s27 = scalar_lea.sflag [#allocation4], %s875_s3 }
  0x28   : > { %v232_v2 = vld [vmem:[%s191_s7 + $0x10] sm:$0xff]  ;;  %v233_v3 = vld [vmem:[%s191_s7 + $0x18] sm:$0xff]  ;;  %v234_v4 = vld [vmem:[%s191_s7 + $0x20] sm:$0xff]  ;;  %s522_s16 = smul.u32 96, %s753_s12  ;;  %s695_s5 = scalar_lea.hbm %s1011_s2, 192 }
  0x29   : > { %v235_v5 = vld [vmem:[%s191_s7 + $0x28] sm:$0xff]  ;;  %v236_v6 = vld [vmem:[%s191_s7 + $0x30] sm:$0xff]  ;;  %v237_v7 = vld [vmem:[%s191_s7 + $0x38] sm:$0xff]  ;;  %v240_v8 = vmax.f32 %v230_v0, %v234_v4  ;;  %s934_s15 = scalar_lea.vmem [#allocation7], %s521_s21 }
  0x2a   : > { %v243_v9 = vmax.f32 %v231_v1, %v235_v5  ;;  %v241_v10 = vmax.f32 %v232_v2, %v236_v6  ;;  %v244_v11 = vmax.f32 %v233_v3, %v237_v7  ;;  %v892_v30 = vld [vmem:[%s885_s8] sm:$0xff]  ;;  %v895_v31 = vld [vmem:[%s885_s8 + $0x8] sm:$0xff]  ;;  %s378_s20 = scalar_lea.hbm %s1011_s2, %s522_s16  ;;  %s379_s26 = sshll.u32 %s934_s15, 4  ;;  %s380_s26 = int_to_ptr.vmem [resolvable:$true] %s379_s26 }
  0x2b   : > { %vm314_vm0 = vcmp.eq.s32.totalorder %v892_v30, 0  ;;  %vm315_vm1 = vcmp.eq.s32.totalorder %v895_v31, 0  ;;  %vm316_vm2 = vcmp.eq.s32.totalorder %v892_v30, 1  ;;  %vm317_vm3 = vcmp.eq.s32.totalorder %v895_v31, 1  ;;  %s381_s19 = sshll.u32 %s378_s20, 4  ;;  %s382_s19 = int_to_ptr.hbm [resolvable:$true] %s381_s19 }
  0x2c   : > { %v242_v12 = vmax.f32 %v240_v8, %v241_v10  ;;  %v245_v13 = vmax.f32 %v243_v9, %v244_v11  ;;  %vm318_vm4 = vcmp.eq.s32.totalorder %v892_v30, 2  ;;  %vm319_vm5 = vcmp.eq.s32.totalorder %v895_v31, 2  ;;  %s689_s28 = sshra.s32 %s382_s19, 4  ;;  %s690_s28 = int_to_ptr.hbm [resolvable:$true] %s689_s28 }
  0x2d   : > { %vm320_vm6 = vcmp.eq.s32.totalorder %v892_v30, 3  ;;  %vm321_vm7 = vcmp.eq.s32.totalorder %v895_v31, 3  ;;  %v330_v40 = vsel %vm314_vm0, 1.0, %v765_v39  ;;  %v331_v41 = vsel %vm315_vm1, 1.0, %v765_v39  ;;  %s691_s29 = scalar_lea.hbm %s690_s28, 96  ;;  %p696_p7 = scmp.lt.s32.totalorder %s690_s28, %s1011_s2 }
  0x2e   : > { %v246_v14 = vsub.f32 %v230_v0, %v242_v12  ;;  %v247_v15 = vsub.f32 %v231_v1, %v245_v13  ;;  %v248_v16 = vsub.f32 %v232_v2, %v242_v12  ;;  %v249_v17 = vsub.f32 %v233_v3, %v245_v13  ;;  %p692_p4 = scmp.ne.s32.totalorder %s690_s28, %s691_s29  ;;  %p697_p8 = scmp.lt.s32.totalorder %s695_s5, %s691_s29 }
  0x2f   : > { %v250_v18 = vsub.f32 %v234_v4, %v242_v12  ;;  %v251_v19 = vsub.f32 %v235_v5, %v245_v13  ;;  %v252_v20 = vsub.f32 %v236_v6, %v242_v12  ;;  %v253_v24 = vsub.f32 %v237_v7, %v245_v13 }
  0x30   : > { %v254_v21 = vmul.f32 1.442695, %v246_v14  ;;  %v256_v22 = vmul.f32 1.442695, %v247_v15  ;;  %v258_v23 = vmul.f32 1.442695, %v248_v16  ;;  %v355_v45 = vadd.f32 %v331_v41, %v330_v40  ;;  %p693_p5 = pnand %p692_p4, %p834_p9  ;;  %p698_p10 = por %p697_p8, %p696_p7 }
  0x31   : > { %v260_v25 = vmul.f32 1.442695, %v249_v17  ;;  %v262_v26 = vmul.f32 1.442695, %v250_v18  ;;  %v264_v27 = vmul.f32 1.442695, %v251_v19 }
  0x32   : > { %595 = vpow2.f32 %v254_v21  ;;  %v266_v28 = vmul.f32 1.442695, %v252_v20  ;;  %v268_v29 = vmul.f32 1.442695, %v253_v24  ;;  %v332_v42 = vsel %vm316_vm2, 1.0, %v765_v39  ;;  %512 = vst [vmem:[%s934_s15 + $0x40] sm:$0xff] %v355_v45  ;;  %p694_p6 = pneg %p693_p5 }
  0x33   : > { %597 = vpow2.f32 %v256_v22  ;;  %v333_v46 = vsel %vm317_vm3, 1.0, %v765_v39  ;;  %v334_v47 = vsel %vm318_vm4, 1.0, %v765_v39  ;;  %v335_v51 = vsel %vm319_vm5, 1.0, %v765_v39 }
  0x34   : > { %599 = vpow2.f32 %v258_v23  ;;  %v356_v50 = vadd.f32 %v333_v46, %v332_v42  ;;  %v336_v52 = vsel %vm320_vm6, 1.0, %v765_v39  ;;  %v357_v55 = vadd.f32 %v335_v51, %v334_v47  ;;  %p699_p13 = pnand %p698_p10, %p694_p6 }
  0x35   : > { %601 = vpow2.f32 %v260_v25  ;;  %v337_v56 = vsel %vm321_vm7, 1.0, %v765_v39 }
  0x36   : > { %603 = vpow2.f32 %v262_v26  ;;  %513 = vst [vmem:[%s934_s15 + $0x48] sm:$0xff] %v356_v50  ;;  %v358_v58 = vadd.f32 %v337_v56, %v336_v52 }
  0x37   : > { %605 = vpow2.f32 %v264_v27  ;;  %514 = vst [vmem:[%s934_s15 + $0x50] sm:$0xff] %v357_v55 }
  0x38   : > { %v897_v32 = vpop.eup %595  ;;  %607 = vpow2.f32 %v266_v28  ;;  %515 = vst [vmem:[%s934_s15 + $0x58] sm:$0xff] %v358_v58 }
  0x39   : > { %v900_v33 = vpop.eup %597  ;;  %609 = vpow2.f32 %v268_v29 }
  0x3a   : > { %v905_v34 = vpop.eup %599 }
  0x3b   : > { %v910_v35 = vpop.eup %601  ;;  %v270_v36 = vadd.f32 %v905_v34, %v897_v32 }
  0x3c   : > { %v604_v37 = vpop.eup %603  ;;  %v273_v38 = vadd.f32 %v910_v35, %v900_v33 }
  0x3d   : > { %v606_v43 = vpop.eup %605  ;;  %v271_v44 = vadd.f32 %v604_v37, %v270_v36 }
  0x3e   : > { %v608_v48 = vpop.eup %607  ;;  %v274_v49 = vadd.f32 %v606_v43, %v273_v38 }
  0x3f   : > { %v610_v53 = vpop.eup %609  ;;  %v272_v54 = vadd.f32 %v608_v48, %v271_v44 }
  0x40   : > { %v275_v57 = vadd.f32 %v610_v53, %v274_v49 }
  0x41   : > { %611 = vrcp.f32 %v272_v54  ;;  %vm281_vm8 = vweird.f32 %v272_v54  ;;  %v287_v62 = vand.u32 2147483648, %v272_v54  ;;  %v285_v1 = vand.u32 2147483647, %v272_v54 }
  0x42   : > { %613 = vrcp.f32 %v275_v57  ;;  %v302_v2 = vand.u32 2147483648, %v275_v57  ;;  %vm296_vm10 = vweird.f32 %v275_v57  ;;  %v300_v4 = vand.u32 2147483647, %v275_v57 }
  0x43   : > { %v288_v6 = vor.u32 1.1754944e-38, %v287_v62  ;;  %vm286_vm13 = vcmp.eq.f32.partialorder %v285_v1, 8.507059e+37 }
  0x44   : > { %v303_v9 = vor.u32 1.1754944e-38, %v302_v2  ;;  %vm301_vm15 = vcmp.eq.f32.partialorder %v300_v4, 8.507059e+37 }
  0x47   : > { %v612_v59 = vpop.eup %611 }
  0x48   : > { %v614_v60 = vpop.eup %613  ;;  %v277_v61 = vmul.f32 %v612_v59, %v272_v54  ;;  %vm282_vm9 = vweird.f32 %v612_v59 }
  0x49   : > { %v292_v63 = vmul.f32 %v614_v60, %v275_v57  ;;  %vm297_vm11 = vweird.f32 %v614_v60  ;;  %vm283_vm12 = vmor %vm281_vm8, %vm282_vm9 }
  0x4a   : > { %v278_v0 = vsub.f32 1.0, %v277_v61  ;;  %vm298_vm14 = vmor %vm296_vm10, %vm297_vm11 }
  0x4b   : > { %v293_v3 = vsub.f32 1.0, %v292_v63 }
  0x4c   : > { %v279_v5 = vmul.f32 %v612_v59, %v278_v0 }
  0x4d   : > { %v294_v7 = vmul.f32 %v614_v60, %v293_v3 }
  0x4e   : > { %v280_v8 = vadd.f32 %v612_v59, %v279_v5 }
  0x4f   : > { %v295_v10 = vadd.f32 %v614_v60, %v294_v7 }
  0x50   : > { %v284_v11 = vsel %vm283_vm12, %v612_v59, %v280_v8 }
  0x51   : > { %v289_v12 = vsel %vm286_vm13, %v288_v6, %v284_v11  ;;  %v299_v13 = vsel %vm298_vm14, %v614_v60, %v295_v10 }
  0x52   : > { %v304_v14 = vsel %vm301_vm15, %v303_v9, %v299_v13  ;;  %v306_v15 = vmul.f32 %v897_v32, %v289_v12  ;;  %v308_v16 = vmul.f32 %v905_v34, %v289_v12  ;;  %v310_v17 = vmul.f32 %v604_v37, %v289_v12 }
  0x53   : > { %v307_v18 = vmul.f32 %v900_v33, %v304_v14  ;;  %v309_v19 = vmul.f32 %v910_v35, %v304_v14  ;;  %v311_v20 = vmul.f32 %v606_v43, %v304_v14  ;;  %v312_v21 = vmul.f32 %v608_v48, %v289_v12 }
  0x54   : > { %v322_v22 = vsel %vm314_vm0, %v306_v15, 0.0  ;;  %v324_v23 = vsel %vm316_vm2, %v308_v16, 0.0  ;;  %v326_v24 = vsel %vm318_vm4, %v310_v17, 0.0  ;;  %v313_v25 = vmul.f32 %v610_v53, %v304_v14 }
  0x55   : > { %v323_v26 = vsel %vm315_vm1, %v307_v18, 0.0  ;;  %v325_v27 = vsel %vm317_vm3, %v309_v19, 0.0  ;;  %v327_v28 = vsel %vm319_vm5, %v311_v20, 0.0  ;;  %v328_v29 = vsel %vm320_vm6, %v312_v21, 0.0 }
  0x56   : > { %v338_v32 = vadd.f32 %v323_v26, %v322_v22  ;;  %v339_v33 = vadd.f32 %v325_v27, %v324_v23  ;;  %v340_v34 = vadd.f32 %v327_v28, %v326_v24  ;;  %v329_v35 = vsel %vm321_vm7, %v313_v25, 0.0 }
  0x57   : > { %v341_v36 = vadd.f32 %v329_v35, %v328_v29  ;;  %v346_v30 = vadd.f32 %v307_v18, %v306_v15  ;;  %v347_v37 = vadd.f32 %v309_v19, %v308_v16  ;;  %v348_v38 = vadd.f32 %v311_v20, %v310_v17 }
  0x58   : > { %342 = vst [vmem:[%s934_s15] sm:$0xff] %v338_v32  ;;  %v349_v31 = vadd.f32 %v313_v25, %v312_v21 }
  0x59   : > { %343 = vst [vmem:[%s934_s15 + $0x8] sm:$0xff] %v339_v33 }
  0x5a   : > { %344 = vst [vmem:[%s934_s15 + $0x10] sm:$0xff] %v340_v34 }
  0x5b   : > { %345 = vst [vmem:[%s934_s15 + $0x18] sm:$0xff] %v341_v36 }
  0x5c   : > { %508 = vst [vmem:[%s934_s15 + $0x20] sm:$0xff] %v346_v30 }
  0x5d   : > { %509 = vst [vmem:[%s934_s15 + $0x28] sm:$0xff] %v347_v37 }
  0x5e   : > { %510 = vst [vmem:[%s934_s15 + $0x30] sm:$0xff] %v348_v38 }
  0x5f   : > { %511 = vst [vmem:[%s934_s15 + $0x38] sm:$0xff] %v349_v31 }
  0x60   : > { %702 = shalt.err (!%p699_p13)
}
  0x61   : > { %s766_s3 = smov 128   ;;  %s767_s6 = smov 8  }
  0x62   : > { %527 = dma.vmem_to_hbm [thread:$0]  (%p834_p9), %s380_s26, 1536, %s382_s19, %s365_s27, %s766_s3, %s766_s3, %s767_s6  }
  0x63 PF: > { %s396_s8 = sand.u32 1, %s741_s9   ;;  %p537_p0 = pnand %p498_p12, %p841_p11 }
  0x64   : > { %s397_s21 = scalar_lea.sflag [#allocation4], %s396_s8 }
  0x65   : > { %p538_p1 = pneg %p537_p0 }
  0x67   : > { %736 = dma.done.wait (%p538_p1), %s397_s21, 1536  }
  0x68   : > { %738 = vsyncadd (%p538_p1), %s397_s21, 4294965760  ;;  %s21_s14 = sadd.s32 1, %s761_s14   ;;  %s1017_s9 = smov %s745_s10 }
  0x69   : > { %p18_p2 = scmp.ge.s32.totalorder %s21_s14, 4   ;;  %s1018_s10 = smov %s749_s11 }
  0x6a   : > { %s1019_s11 = smov %s839_s23  ;;  %s1020_s12 = smov %s757_s13 }
  0x6b   : > { %s1021_s13 = smov %s1023_s17  ;;  %20 = sbr.rel (!%p18_p2) target bundleno = 8 (0x8), region = 88 }
  0x70   :  { %403 = vsyncpa [#allocation3], 1 }
  0x71   :  { %405 = vsyncpa [#allocation3 + $0x1], 1 }
  0x72   :  { %406 = vsyncpa [#allocation6], 1 }
  0x73   :  { %408 = vsyncpa [#allocation6 + $0x1], 1 }
  0x74   :  { %409 = vsyncpa [#allocation4], 1 }
  0x75   :  { %411 = vsyncpa [#allocation4 + $0x1], 1 }

</bundles_post_ra>
